<compile_context>
chip_gen: v6e
topology: v6e:2x2x1
jax: 0.10.0
libtpu: 0.0.40
codegen_flags: <defaults>
</compile_context>

<pallas_src>
import jax
import jax.numpy as jnp
from jax.experimental import pallas as pl
from jax.experimental.pallas import tpu as pltpu


def _round_up(x: int, m: int) -> int:
    return (x + m - 1) // m * m


def _round_down(x: int, m: int) -> int:
    return (x // m) * m


def _partials_kernel(x_ref, y_ref, ce_ref, bce_ref):
    """One (M, TB) tile: batch on lanes, label slate on sublanes.

    Writes per-column (= per original row) partials:
      ce_ref[0, j]  = logsumexp_M(x[:, j]) - x[0, j]          (listwise CE, class 0)
      bce_ref[0, j] = sum_M BCEWithLogits(x[:, j], y[:, j])   (pointwise, unreduced)
    """
    x = x_ref[...].astype(jnp.float32)   # (M, TB) logits
    y = y_ref[...].astype(jnp.float32)   # (M, TB) relevance scores

    # ---- listwise: cross-entropy with class index 0 for every original row ----
    m = jnp.max(x, axis=0, keepdims=True)                                # (1, TB)
    lse = m + jnp.log(jnp.sum(jnp.exp(x - m), axis=0, keepdims=True))    # (1, TB)
    ce_ref[...] = lse - x[0:1, :]

    # ---- pointwise: BCE-with-logits, summed over the slate axis per column ----
    bce = jnp.maximum(x, 0.0) - x * y + jnp.log1p(jnp.exp(-jnp.abs(x)))  # (M, TB)
    bce_ref[...] = jnp.sum(bce, axis=0, keepdims=True)


def hybrid_loss(preds: jax.Array,
                target: jax.Array,
                alpha=0.5,
                *,
                use_pointwise: bool = True,
                block_b: int | None = None) -> jax.Array:
    """Scalar f32 loss matching the PyTorch ListwisePointwiseHybridLoss.forward."""
    B, M = preds.shape
    assert target.shape == (B, M)
    itemsize = jnp.dtype(preds.dtype).itemsize

    # ---- choose the lane tile TB over the batch axis ---------------------------
    # Target ~2 MiB per input block (big enough to reach HBM roofline, small
    # enough that 2 inputs x 2 pipeline buffers stay well under 32 MiB scoped
    # VMEM on every generation, including v7x's 64 MiB physical VMEM).
    if block_b is None:
        target_block_bytes = 2 * 1024 * 1024
        tb = _round_down(max(target_block_bytes // max(1, M * itemsize), 128), 128)
        tb = max(tb, 128)
    else:
        tb = _round_up(block_b, 128)
    bp = _round_up(B, 128)
    tb = min(tb, bp)
    bp = _round_up(B, tb)          # pad batch so tb divides it exactly
    grid = (bp // tb,)

    # ---- lane-dense layout: batch -> lanes (zero-pad the batch tail) -----------
    xt = jnp.transpose(preds)      # (M, B)
    yt = jnp.transpose(target)
    if bp != B:
        pad = ((0, 0), (0, bp - B))
        xt = jnp.pad(xt, pad)      # zero logits/targets give finite garbage that
        yt = jnp.pad(yt, pad)      # is sliced away below; they never hit the sums.

    cost = pl.CostEstimate(
        flops=8 * B * M,
        transcendentals=3 * B * M + B,
        bytes_accessed=2 * B * M * itemsize + 2 * bp * 4,
    )

    ce, bce = pl.pallas_call(
        _partials_kernel,
        out_shape=(jax.ShapeDtypeStruct((1, bp), jnp.float32),
                   jax.ShapeDtypeStruct((1, bp), jnp.float32)),
        grid_spec=pltpu.PrefetchScalarGridSpec(
            num_scalar_prefetch=0,
            grid=grid,
            in_specs=[pl.BlockSpec((M, tb), lambda i: (0, i)),
                      pl.BlockSpec((M, tb), lambda i: (0, i))],
            out_specs=[pl.BlockSpec((1, tb), lambda i: (0, i)),
                       pl.BlockSpec((1, tb), lambda i: (0, i))],
        ),
        compiler_params=pltpu.CompilerParams(
            dimension_semantics=("parallel",),       # independent tiles -> both v7x TCs
            vmem_limit_bytes=32 * 1024 * 1024,
        ),
        cost_estimate=cost,
    )(xt, yt)

    # ---- tiny epilogue: drop padding, take means, alpha-combine (fused by XLA) --
    ce = ce[0, :B]
    bce = bce[0, :B]
    loss1 = jnp.sum(ce) / B
    if not use_pointwise:            # pointwise_loss=None path of the module
        return loss1
    loss2 = jnp.sum(bce) / (B * M)
    return alpha * loss1 + (1.0 - alpha) * loss2


def _reference(preds, target, alpha=0.5):
    # Pure-JAX mirror of torch.nn.CrossEntropyLoss / BCEWithLogitsLoss hybrid.
    x = preds.astype(jnp.float32)
    y = target.astype(jnp.float32)
    lse = jax.scipy.special.logsumexp(x, axis=-1)
    loss1 = jnp.mean(lse - x[:, 0])
    bce = jnp.maximum(x, 0.0) - x * y + jnp.log1p(jnp.exp(-jnp.abs(x)))
    loss2 = jnp.mean(bce)
    return alpha * loss1 + (1.0 - alpha) * loss2


if __name__ == "__main__":
    key = jax.random.PRNGKey(0)

    # Case 1: tiny shape consistent with the module (B queries, M = 1 pos + 15 neg).
    B, M = 8, 16
    k1, k2 = jax.random.split(key)
    preds = jax.random.normal(k1, (B, M), dtype=jnp.float32)
    target = jnp.concatenate(
        [jnp.ones((B, 1), jnp.float32), jnp.zeros((B, M - 1), jnp.float32)], axis=1)

    out = hybrid_loss(preds, target, alpha=0.5)
    jax.block_until_ready(out)
    ref = _reference(preds, target, alpha=0.5)
    assert jnp.allclose(out, ref, rtol=1e-5, atol=1e-5), (out, ref)

    # Listwise-only path (pointwise_loss is None in the PyTorch module).
    out_lw = hybrid_loss(preds, target, use_pointwise=False)
    jax.block_until_ready(out_lw)
    ref_lw = jnp.mean(jax.scipy.special.logsumexp(preds, axis=-1) - preds[:, 0])
    assert jnp.allclose(out_lw, ref_lw, rtol=1e-5, atol=1e-5), (out_lw, ref_lw)

    # Case 2: non-multiple-of-128 batch with a forced small tile so the grid has
    # several steps and the batch-padding path is exercised.
    B2, M2 = 300, 16
    k3, _ = jax.random.split(k2)
    preds2 = jax.random.normal(k3, (B2, M2), dtype=jnp.float32) * 3.0
    target2 = jnp.concatenate(
        [jnp.ones((B2, 1), jnp.float32), jnp.zeros((B2, M2 - 1), jnp.float32)], axis=1)

    out2 = hybrid_loss(preds2, target2, alpha=0.3, block_b=128)
    jax.block_until_ready(out2)
    ref2 = _reference(preds2, target2, alpha=0.3)
    assert jnp.allclose(out2, ref2, rtol=1e-5, atol=1e-5), (out2, ref2)

    print("KERNEL_OK")
</pallas_src>

<mosaic_0001>
module attributes {stable_mosaic.version = 11 : i64} {
  func.func @_partials_kernel(%arg0: i32, %arg1: memref<16x128xf32, #tpu.memory_space<vmem>>, %arg2: memref<16x128xf32, #tpu.memory_space<vmem>>, %arg3: memref<1x128xf32, #tpu.memory_space<vmem>>, %arg4: memref<1x128xf32, #tpu.memory_space<vmem>>) attributes {dimension_semantics = [#tpu.dimension_semantics<parallel>], iteration_bounds = array<i64: 1>, scalar_prefetch = 0 : i64, scratch_operands = 0 : i64, tpu.core_type = #tpu.core_type<tc>, window_params = [{transform_indices = @transform_0, window_bounds = array<i64: 16, 128>}, {transform_indices = @transform_1, window_bounds = array<i64: 16, 128>}, {transform_indices = @transform_2, window_bounds = array<i64: 1, 128>}, {transform_indices = @transform_3, window_bounds = array<i64: 1, 128>}]} {
    %c0 = arith.constant 0 : index
    %c0_0 = arith.constant 0 : index
    %0 = vector.load %arg1[%c0, %c0_0] : memref<16x128xf32, #tpu.memory_space<vmem>>, vector<16x128xf32>
    %c0_1 = arith.constant 0 : index
    %c0_2 = arith.constant 0 : index
    %1 = vector.load %arg2[%c0_1, %c0_2] : memref<16x128xf32, #tpu.memory_space<vmem>>, vector<16x128xf32>
    %cst = arith.constant dense<0xFF800000> : vector<128xf32>
    %2 = vector.multi_reduction <maximumf>, %0, %cst [0] : vector<16x128xf32> to vector<128xf32>
    %3 = vector.shape_cast %2 : vector<128xf32> to vector<1x128xf32>
    %4 = vector.broadcast %3 : vector<1x128xf32> to vector<16x128xf32>
    %5 = arith.subf %0, %4 : vector<16x128xf32>
    %6 = math.exp %5 : vector<16x128xf32>
    %cst_3 = arith.constant dense<0.000000e+00> : vector<128xf32>
    %7 = vector.multi_reduction <add>, %6, %cst_3 [0] : vector<16x128xf32> to vector<128xf32>
    %8 = vector.shape_cast %7 : vector<128xf32> to vector<1x128xf32>
    %9 = math.log %8 : vector<1x128xf32>
    %10 = arith.addf %3, %9 : vector<1x128xf32>
    %11 = vector.extract_strided_slice %0 {offsets = [0, 0], sizes = [1, 128], strides = [1, 1]} : vector<16x128xf32> to vector<1x128xf32>
    %12 = arith.subf %10, %11 : vector<1x128xf32>
    %c0_4 = arith.constant 0 : index
    %c0_5 = arith.constant 0 : index
    %13 = vector.load %arg3[%c0_4, %c0_5] : memref<1x128xf32, #tpu.memory_space<vmem>>, vector<1x128xf32>
    tpu.vector_store %arg3[%c0_4, %c0_5], %12 {strides = array<i32>} : memref<1x128xf32, #tpu.memory_space<vmem>>, vector<1x128xf32>,
    %cst_6 = arith.constant 0.000000e+00 : f32
    %14 = vector.broadcast %cst_6 : f32 to vector<16x128xf32>
    %15 = arith.maximumf %0, %14 : vector<16x128xf32>
    %16 = arith.mulf %0, %1 : vector<16x128xf32>
    %17 = arith.subf %15, %16 : vector<16x128xf32>
    %18 = math.absf %0 : vector<16x128xf32>
    %cst_7 = arith.constant 0.000000e+00 : f32
    %19 = vector.broadcast %cst_7 : f32 to vector<16x128xf32>
    %20 = arith.subf %19, %18 : vector<16x128xf32>
    %21 = math.exp %20 : vector<16x128xf32>
    %22 = math.log1p %21 : vector<16x128xf32>
    %23 = arith.addf %17, %22 : vector<16x128xf32>
    %cst_8 = arith.constant dense<0.000000e+00> : vector<128xf32>
    %24 = vector.multi_reduction <add>, %23, %cst_8 [0] : vector<16x128xf32> to vector<128xf32>
    %25 = vector.shape_cast %24 : vector<128xf32> to vector<1x128xf32>
    %c0_9 = arith.constant 0 : index
    %c0_10 = arith.constant 0 : index
    %26 = vector.load %arg4[%c0_9, %c0_10] : memref<1x128xf32, #tpu.memory_space<vmem>>, vector<1x128xf32>
    tpu.vector_store %arg4[%c0_9, %c0_10], %25 {strides = array<i32>} : memref<1x128xf32, #tpu.memory_space<vmem>>, vector<1x128xf32>,
    return
  }
  func.func @transform_0(%arg0: i32) -> (i32, i32) {
    %c0_i32 = arith.constant 0 : i32
    %c0_i32_0 = arith.constant 0 : i32
    return %c0_i32, %arg0 : i32, i32
  }
  func.func @transform_1(%arg0: i32) -> (i32, i32) {
    %c0_i32 = arith.constant 0 : i32
    %c0_i32_0 = arith.constant 0 : i32
    return %c0_i32, %arg0 : i32, i32
  }
  func.func @transform_2(%arg0: i32) -> (i32, i32) {
    %c0_i32 = arith.constant 0 : i32
    %c0_i32_0 = arith.constant 0 : i32
    return %c0_i32, %arg0 : i32, i32
  }
  func.func @transform_3(%arg0: i32) -> (i32, i32) {
    %c0_i32 = arith.constant 0 : i32
    %c0_i32_0 = arith.constant 0 : i32
    return %c0_i32, %arg0 : i32, i32
  }
}

</mosaic_0001>

<bundles_post_ra>
// kernel: tpu_custom_call.1
= control target key start
LH: loop header
LB: loop body
LE: loop exit
PB: predicated region body
PF: predicated region fallthrough
CT: control target
= control target key end

     0   :  { %9 = vsyncpa [#allocation3], 0  ;;  %s303_s0 = inlined_call_operand.hbm [shape: f32[16,128], index: 0, kind: input, shape index: {}]   ;;  %s304_s1 = inlined_call_operand.hbm [shape: f32[16,128], index: 1, kind: input, shape index: {}]   ;;  %s305_s2 = inlined_call_operand.hbm [shape: f32[1,128], index: 2, kind: output, shape index: {0}]   ;;  %s306_s3 = inlined_call_operand.hbm [shape: f32[1,128], index: 3, kind: output, shape index: {1}]  }
   0x1   :  { %10 = vsyncpa [#allocation6], 0 }
   0x2   :  { %11 = vsyncpa [#allocation4], 0 }
   0x3   :  { %12 = vsyncpa [#allocation9], 0  ;;  %s252_s12 = smov [#allocation2]  }
   0x4   :  { %s18_s13 = sshll.u32 %s252_s12, 4  ;;  %s19_s13 = int_to_ptr.vmem [resolvable:$true] %s18_s13 }
   0x5   :  { %s172_s14 = scalar_lea.vmem %s19_s13, 256  ;;  %p177_p1 = scmp.lt.s32.totalorder %s19_s13, %s19_s13 }
   0x6   :  { %p173_p0 = scmp.ne.s32.totalorder %s19_s13, %s172_s14  ;;  %p178_p2 = scmp.lt.s32.totalorder %s172_s14, %s172_s14 }
   0x8   :  { %p179_p3 = por %p178_p2, %p177_p1 }
   0xa   :  { %p180_p4 = pnand %p179_p3, %p173_p0 }
   0xc   :  { %183 = shalt.err (!%p180_p4)
}
   0xd   :  { %s253_s15 = smov 128   ;;  %s254_s16 = smov 8  }
   0xe   :  { %24 = dma.hbm_to_vmem [thread:$0]  %s303_s0, 256, %s19_s13, [#allocation3], %s253_s15, %s253_s15, %s254_s16  }
   0xf   :  { %s255_s19 = smov [#allocation5]  }
  0x10   :  { %s30_s20 = sshll.u32 %s255_s19, 4  ;;  %s31_s20 = int_to_ptr.vmem [resolvable:$true] %s30_s20 }
  0x11   :  { %s192_s21 = scalar_lea.vmem %s31_s20, 256  ;;  %p197_p6 = scmp.lt.s32.totalorder %s31_s20, %s31_s20 }
  0x12   :  { %p193_p5 = scmp.ne.s32.totalorder %s31_s20, %s192_s21  ;;  %p198_p7 = scmp.lt.s32.totalorder %s192_s21, %s192_s21 }
  0x14   :  { %p199_p8 = por %p198_p7, %p197_p6 }
  0x16   :  { %p200_p9 = pnand %p199_p8, %p193_p5 }
  0x18   :  { %203 = shalt.err (!%p200_p9)
}
  0x19   :  { %36 = dma.hbm_to_vmem [thread:$0]  %s304_s1, 256, %s31_s20, [#allocation6], %s253_s15, %s253_s15, %s254_s16  }
  0x1a   :  { %244 = dma.done.wait [#allocation3], 256  }
  0x1b   :  { %245 = vsyncadd [#allocation3], 4294967040 }
  0x1c   :  { %246 = dma.done.wait [#allocation6], 256  }
  0x1d   :  { %247 = vsyncadd [#allocation6], 4294967040  ;;  %v284_v0 = vld [vmem:[#allocation2] sm:$0xff]  ;;  %v44_v1 = vld [vmem:[#allocation2 + $0x8] sm:$0xff]  ;;  %s256_s0 = smov [#allocation8]  }
  0x1e   :  { %v47_v2 = vmax.f32 %v284_v0, %v44_v1  ;;  %v78_v3 = vand.u32 2147483647, %v284_v0  ;;  %v79_v4 = vand.u32 2147483647, %v44_v1  ;;  %v45_v25 = vld [vmem:[#allocation5] sm:$0xff]  ;;  %v46_v26 = vld [vmem:[#allocation5 + $0x8] sm:$0xff] }
  0x1f   :  { %v72_v29 = vmax.f32 %v284_v0, 0.0  ;;  %v74_v30 = vmul.f32 %v45_v25, %v284_v0  ;;  %v73_v34 = vmax.f32 %v44_v1, 0.0  ;;  %v75_v35 = vmul.f32 %v46_v26, %v44_v1  ;;  %s130_s1 = sshll.u32 %s256_s0, 4  ;;  %s131_s1 = int_to_ptr.vmem [resolvable:$true] %s130_s1 }
  0x20   :  { %v48_v5 = vrot.slane %v47_v2, 4  ;;  %v80_v6 = vsub.f32 0.0, %v78_v3  ;;  %v81_v7 = vsub.f32 0.0, %v79_v4  ;;  %s204_s24 = scalar_lea.vmem %s131_s1, 16  ;;  %s208_s25 = scalar_lea.vmem %s131_s1, 32 }
  0x21   :  { %v76_v41 = vsub.f32 %v72_v29, %v74_v30  ;;  %v77_v44 = vsub.f32 %v73_v34, %v75_v35  ;;  %p205_p10 = scmp.ne.s32.totalorder %s131_s1, %s204_s24  ;;  %p209_p11 = scmp.lt.s32.totalorder %s131_s1, %s131_s1 }
  0x22   :  { %v49_v8 = vmax.f32 %v47_v2, %v48_v5  ;;  %v82_v9 = vmul.f32 1.442695, %v80_v6  ;;  %v84_v10 = vmul.f32 1.442695, %v81_v7  ;;  %p210_p12 = scmp.lt.s32.totalorder %s208_s25, %s204_s24 }
  0x24   :  { %v50_v11 = vrot.slane %v49_v8, 2  ;;  %150 = vpow2.f32 %v82_v9  ;;  %p211_p13 = por %p210_p12, %p209_p11 }
  0x25   :  { %152 = vpow2.f32 %v84_v10 }
  0x26   :  { %v51_v12 = vmax.f32 %v49_v8, %v50_v11  ;;  %p212_p0 = pnand %p211_p13, %p205_p10 }
  0x28   :  { %v52_v13 = vrot.slane %v51_v12, 1 }
  0x2a   :  { %v288_v14 = vmax.f32 %v51_v12, %v52_v13 }
  0x2c   :  { %v54_v15 = vsub.f32 %v284_v0, %v288_v14  ;;  %v55_v16 = vsub.f32 %v44_v1, %v288_v14 }
  0x2e   :  { %v56_v17 = vmul.f32 1.442695, %v54_v15  ;;  %v58_v18 = vmul.f32 1.442695, %v55_v16 }
  0x30   :  { %154 = vpow2.f32 %v56_v17 }
  0x31   :  { %v151_v19 = vpop.eup %150  ;;  %156 = vpow2.f32 %v58_v18 }
  0x32   :  { %v153_v20 = vpop.eup %152  ;;  %v86_v21 = vadd.f32 1.0, %v151_v19  ;;  %v89_v23 = vmul.f32 -0.5, %v151_v19  ;;  %v92_v31 = vand.u32 2147483647, %v151_v19 }
  0x33   :  { %v95_v22 = vadd.f32 1.0, %v153_v20  ;;  %v98_v24 = vmul.f32 -0.5, %v153_v20  ;;  %v101_v36 = vand.u32 2147483647, %v153_v20 }
  0x34   :  { %158 = vlog2.f32 %v86_v21  ;;  %v90_v27 = vadd.f32 1.0, %v89_v23  ;;  %vm93_vm0 = vcmp.lt.f32.partialorder %v92_v31, 0.0004427343 }
  0x35   :  { %160 = vlog2.f32 %v95_v22  ;;  %v99_v32 = vadd.f32 1.0, %v98_v24  ;;  %vm102_vm1 = vcmp.lt.f32.partialorder %v101_v36, 0.0004427343 }
  0x36   :  { %v91_v38 = vmul.f32 %v151_v19, %v90_v27 }
  0x37   :  { %v100_v42 = vmul.f32 %v153_v20, %v99_v32 }
  0x3d   :  { %v155_v28 = vpop.eup %154 }
  0x3e   :  { %v157_v33 = vpop.eup %156 }
  0x3f   :  { %v60_v37 = vadd.f32 %v157_v33, %v155_v28 }
  0x41   :  { %v159_v39 = vpop.eup %158  ;;  %v61_v40 = vrot.slane %v60_v37, 4 }
  0x42   :  { %v161_v43 = vpop.eup %160  ;;  %v88_v45 = vmul.f32 0.6931472, %v159_v39 }
  0x43   :  { %v62_v46 = vadd.f32 %v61_v40, %v60_v37  ;;  %v97_v47 = vmul.f32 0.6931472, %v161_v43 }
  0x44   :  { %v94_v48 = vsel %vm93_vm0, %v91_v38, %v88_v45 }
  0x45   :  { %v63_v49 = vrot.slane %v62_v46, 2  ;;  %v103_v50 = vsel %vm102_vm1, %v100_v42, %v97_v47  ;;  %v104_v51 = vadd.f32 %v94_v48, %v76_v41 }
  0x46   :  { %v105_v52 = vadd.f32 %v103_v50, %v77_v44 }
  0x47   :  { %v64_v53 = vadd.f32 %v63_v49, %v62_v46 }
  0x48   :  { %v106_v54 = vadd.f32 %v105_v52, %v104_v51 }
  0x49   :  { %v65_v55 = vrot.slane %v64_v53, 1 }
  0x4a   :  { %v107_v56 = vrot.slane %v106_v54, 4 }
  0x4b   :  { %v66_v57 = vadd.f32 %v65_v55, %v64_v53 }
  0x4c   :  { %v108_v58 = vadd.f32 %v107_v56, %v106_v54 }
  0x4d   :  { %162 = vlog2.f32 %v66_v57 }
  0x4e   :  { %v109_v59 = vrot.slane %v108_v58, 2 }
  0x50   :  { %v110_v60 = vadd.f32 %v109_v59, %v108_v58 }
  0x52   :  { %v111_v61 = vrot.slane %v110_v60, 1 }
  0x54   :  { %v112_v62 = vadd.f32 %v111_v61, %v110_v60 }
  0x56   :  { %113 = vst [vmem:[#allocation8] sm:$0x1] %v112_v62 }
  0x57   :  { %215 = shalt.err (!%p212_p0)
}
  0x58   :  { %133 = dma.vmem_to_hbm [thread:$0]  %s131_s1, 16, %s306_s3, [#allocation9]  }
  0x59   :  { %s257_s28 = smov [#allocation7]  }
  0x5a   :  { %v163_v63 = vpop.eup %162  ;;  %s120_s29 = sshll.u32 %s257_s28, 4  ;;  %s121_s29 = int_to_ptr.vmem [resolvable:$true] %s120_s29 }
  0x5b   :  { %v68_v1 = vmul.f32 0.6931472, %v163_v63  ;;  %s224_s30 = scalar_lea.vmem %s121_s29, 16  ;;  %s228_s4 = scalar_lea.vmem %s121_s29, 32 }
  0x5c   :  { %p225_p1 = scmp.ne.s32.totalorder %s121_s29, %s224_s30  ;;  %p229_p2 = scmp.lt.s32.totalorder %s121_s29, %s121_s29 }
  0x5d   :  { %v69_v2 = vadd.f32 %v68_v1, %v288_v14  ;;  %p230_p3 = scmp.lt.s32.totalorder %s228_s4, %s224_s30 }
  0x5f   :  { %v70_v3 = vsub.f32 %v69_v2, %v284_v0  ;;  %p231_p4 = por %p230_p3, %p229_p2 }
  0x61   :  { %71 = vst [vmem:[#allocation7] sm:$0x1] %v70_v3  ;;  %p232_p5 = pnand %p231_p4, %p225_p1 }
  0x63   :  { %235 = shalt.err (!%p232_p5)
}
  0x64   :  { %123 = dma.vmem_to_hbm [thread:$0]  %s121_s29, 16, %s305_s2, [#allocation4]  }
  0x65   :  { %248 = dma.done.wait [#allocation4], 16  }
  0x66   :  { %249 = vsyncadd [#allocation4], 4294967280 }
  0x67   :  { %250 = dma.done.wait [#allocation9], 16  }
  0x68   :  { %251 = vsyncadd [#allocation9], 4294967280 }
  0x69   :  { %140 = vsyncpa [#allocation3], 1 }
  0x6a   :  { %141 = vsyncpa [#allocation6], 1 }
  0x6b   :  { %142 = vsyncpa [#allocation4], 1 }
  0x6c   :  { %143 = vsyncpa [#allocation9], 1 }

</bundles_post_ra>
